<compile_context>
chip_gen: v5e
topology: v5e:2x2
jax: 0.10.0
libtpu: 0.0.40
codegen_flags: <defaults>
</compile_context>

<pallas_src>
import functools

import jax
import jax.numpy as jnp
from jax.experimental import pallas as pl
from jax.experimental.pallas import tpu as pltpu


def _round_up(v, m):
    return ((v + m - 1) // m) * m


def _cdiv(a, b):
    return -(-a // b)


def _vmem_capacity_bytes():
    try:
        info = pltpu.get_tpu_info()
        cap = getattr(info, "vmem_capacity_bytes", None)
        if cap:
            return int(cap)
    except Exception:
        pass
    return 64 << 20  # conservative fallback: v7x per-TensorCore VMEM


# ~3/4 of physical VMEM: 48 MiB on v7x, 96 MiB on v5e/v6e. Never request more than this.
_VMEM_USABLE = max(24 << 20, (_vmem_capacity_bytes() * 3) // 4)
_MARGIN = 4 << 20


def _mlp_attn(avg, mx, w1t, w2t):
    """Column-oriented bottleneck MLP; avg/mx are (C, 1), returns attention (C, 1) in f32."""
    c = avg.shape[0]
    # pooled[:, 0] = avg, pooled[:, 1] = max (built with a select; avoids a lane concat), so the
    # two pooled branches share one pair of tiny matmuls and C stays on the sublane axis.
    col = jax.lax.broadcasted_iota(jnp.int32, (c, 2), 1)
    pooled = jnp.where(col == 0, avg, mx)                                              # (C, 2)
    h = jnp.maximum(jnp.dot(w1t, pooled, preferred_element_type=jnp.float32), 0.0)     # (Cr, 2)
    a = jax.nn.sigmoid(jnp.dot(w2t, h, preferred_element_type=jnp.float32))            # (C, 2)
    return jnp.sum(a, axis=1, keepdims=True)                                           # (C, 1)


def _fused_kernel(x_ref, w1t_ref, w2t_ref, o_ref, *, true_s):
    # Blocks: x/o (1, C, S) -- whole batch slab resident in VMEM; w1t (Cr, C); w2t (C, Cr).
    x = x_ref[0]                                                        # (C, S), native dtype
    xf = x.astype(jnp.float32)
    avg = jnp.sum(xf, axis=-1, keepdims=True) * (1.0 / true_s)          # (C, 1)
    mx = jnp.max(xf, axis=-1, keepdims=True)                            # (C, 1)
    attn = _mlp_attn(avg, mx, w1t_ref[...], w2t_ref[...])               # (C, 1) f32
    o_ref[0] = x * attn.astype(x.dtype)


def _reduce_mlp_kernel(x_ref, w1t_ref, w2t_ref, attn_ref, sum_acc, max_acc, *, true_s, rem):
    # x block (1, C, TS); attn block (1, C, 1). `rem` (static Python int) = number of valid lanes
    # in the last S-tile, or None when TS divides S exactly.
    s_idx = pl.program_id(1)
    n_s = pl.num_programs(1)

    @pl.when(s_idx == 0)
    def _init():
        sum_acc[...] = jnp.zeros_like(sum_acc)
        max_acc[...] = jnp.full_like(max_acc, -jnp.inf)

    x = x_ref[0].astype(jnp.float32)                                    # (C, TS)

    def _accumulate(x_for_sum, x_for_max):
        sum_acc[...] += jnp.sum(x_for_sum, axis=-1, keepdims=True)
        max_acc[...] = jnp.maximum(max_acc[...], jnp.max(x_for_max, axis=-1, keepdims=True))

    if rem is None:
        _accumulate(x, x)
    else:
        # Only the final tile of each batch is ragged: mask it there (sum->0, max->-inf); every
        # other tile takes the unmasked fast path (no iota/compare/select in the hot loop).
        @pl.when(s_idx < n_s - 1)
        def _full_tile():
            _accumulate(x, x)

        @pl.when(s_idx == n_s - 1)
        def _ragged_tile():
            valid = jax.lax.broadcasted_iota(jnp.int32, x.shape, 1) < rem
            _accumulate(jnp.where(valid, x, 0.0), jnp.where(valid, x, -jnp.inf))

    @pl.when(s_idx == n_s - 1)
    def _finalize():
        avg = sum_acc[...] * (1.0 / true_s)                             # (C, 1)
        attn = _mlp_attn(avg, max_acc[...], w1t_ref[...], w2t_ref[...])
        attn_ref[0] = attn.astype(attn_ref.dtype)


def _scale_kernel(x_ref, attn_ref, o_ref):
    # x/o block (1, C, TS); attn block (1, C, 1). Multiply in the input's native dtype (bf16 stays
    # bf16 on v6e/v7x); the attention itself was computed in f32 in pass 1.
    o_ref[0] = x_ref[0] * attn_ref[0].astype(o_ref.dtype)


@functools.partial(jax.jit, static_argnames=("force_two_pass", "tile_bytes"))
def channel_attention(x, w1, w2, *, force_two_pass=False, tile_bytes=None):
    """x: (B, C, D, H, W); w1: (C, Cr); w2: (Cr, C). Returns x * channel_attention(x)."""
    b, c, d, h, w = x.shape
    s = d * h * w
    itemsize = jnp.dtype(x.dtype).itemsize
    sublane = max(8, 32 // itemsize)            # sublane packing granularity for this dtype
    c_pad = _round_up(c, sublane)
    s_lanes = _round_up(s, 128)
    cr = w1.shape[1]

    xf = x.reshape(b, c, s)
    w1t = w1.T                                   # (Cr, C)
    w2t = w2.T                                   # (C, Cr)

    slab_bytes = c_pad * s_lanes * itemsize      # one (C, S) batch slab in VMEM

    # ---- Fused single-pass path: whole batch slab resident -> 2x|x| HBM traffic ----
    if not force_two_pass and 4 * slab_bytes + _MARGIN <= _VMEM_USABLE:
        vmem_limit = int(min(_VMEM_USABLE, max(16 << 20, 4 * slab_bytes + _MARGIN)))
        out = pl.pallas_call(
            functools.partial(_fused_kernel, true_s=s),
            out_shape=jax.ShapeDtypeStruct((b, c, s), x.dtype),
            grid_spec=pltpu.PrefetchScalarGridSpec(
                num_scalar_prefetch=0,
                grid=(b,),
                in_specs=[
                    pl.BlockSpec((1, c, s), lambda i: (i, 0, 0)),
                    pl.BlockSpec((cr, c), lambda i: (0, 0)),
                    pl.BlockSpec((c, cr), lambda i: (0, 0)),
                ],
                out_specs=pl.BlockSpec((1, c, s), lambda i: (i, 0, 0)),
            ),
            compiler_params=pltpu.CompilerParams(
                dimension_semantics=("parallel",),
                vmem_limit_bytes=vmem_limit,
            ),
        )(xf, w1t, w2t)
        return out.reshape(b, c, d, h, w)

    # ---- Two-pass streaming path ----
    # Pass 2 double-buffers 2 inputs + 2 outputs; pass 1 only 2 inputs, so its tile can be ~2x.
    t2_target = tile_bytes if tile_bytes is not None else (8 << 20)
    t2_target = max(512, min(t2_target, (_VMEM_USABLE - _MARGIN) // 4))
    t1_target = min(2 * t2_target, (_VMEM_USABLE - _MARGIN) // 2)

    def _tile_lanes(target_bytes):
        ts = max(128, (target_bytes // (c_pad * itemsize)) // 128 * 128)
        return min(ts, s_lanes)

    ts1 = _tile_lanes(t1_target)
    ts2 = _tile_lanes(t2_target)
    n_s1 = _cdiv(s, ts1)
    n_s2 = _cdiv(s, ts2)
    rem1 = s - (n_s1 - 1) * ts1
    rem1 = None if rem1 == ts1 else rem1         # static: None => no ragged tail in pass 1

    vmem1 = int(min(_VMEM_USABLE, max(16 << 20, 2 * c_pad * ts1 * itemsize + _MARGIN)))
    vmem2 = int(min(_VMEM_USABLE, max(16 << 20, 4 * c_pad * ts2 * itemsize + _MARGIN)))

    # Pass 1: fused sum/max streaming reduction over S + bottleneck MLP -> attn (B, C, 1).
    # TODO(synk): when B == 1 on v7x, split the S axis across the two TensorCores (per-core
    # partial sum/max + tiny combine) instead of leaving one core idle during the reduce pass.
    attn = pl.pallas_call(
        functools.partial(_reduce_mlp_kernel, true_s=s, rem=rem1),
        out_shape=jax.ShapeDtypeStruct((b, c, 1), jnp.float32),
        grid_spec=pltpu.PrefetchScalarGridSpec(
            num_scalar_prefetch=0,
            grid=(b, n_s1),
            in_specs=[
                pl.BlockSpec((1, c, ts1), lambda i, j: (i, 0, j)),
                pl.BlockSpec((cr, c), lambda i, j: (0, 0)),
                pl.BlockSpec((c, cr), lambda i, j: (0, 0)),
            ],
            out_specs=pl.BlockSpec((1, c, 1), lambda i, j: (i, 0, 0)),
            scratch_shapes=[
                pltpu.VMEM((c, 1), jnp.float32),   # running sum
                pltpu.VMEM((c, 1), jnp.float32),   # running max
            ],
        ),
        compiler_params=pltpu.CompilerParams(
            dimension_semantics=("parallel", "arbitrary"),
            vmem_limit_bytes=vmem1,
        ),
    )(xf, w1t, w2t)

    # Pass 2: broadcast multiply, fully parallel over (B, S-tiles); the ragged tail relies on
    # Pallas partial-edge-block masked stores, so no wrapper pad/slice copies are needed.
    out = pl.pallas_call(
        _scale_kernel,
        out_shape=jax.ShapeDtypeStruct((b, c, s), x.dtype),
        grid_spec=pltpu.PrefetchScalarGridSpec(
            num_scalar_prefetch=0,
            grid=(b, n_s2),
            in_specs=[
                pl.BlockSpec((1, c, ts2), lambda i, j: (i, 0, j)),
                pl.BlockSpec((1, c, 1), lambda i, j: (i, 0, 0)),
            ],
            out_specs=pl.BlockSpec((1, c, ts2), lambda i, j: (i, 0, j)),
        ),
        compiler_params=pltpu.CompilerParams(
            dimension_semantics=("parallel", "parallel"),
            vmem_limit_bytes=vmem2,
        ),
    )(xf, attn)
    return out.reshape(b, c, d, h, w)


def _reference(x, w1, w2):
    b, c = x.shape[:2]
    xf = x.reshape(b, c, -1)
    avg = xf.mean(-1)
    mx = xf.max(-1)

    def mlp(v):
        return jax.nn.sigmoid(jnp.maximum(v @ w1, 0.0) @ w2)

    attn = mlp(avg) + mlp(mx)
    return x * attn[:, :, None, None, None]


if __name__ == "__main__":
    key = jax.random.PRNGKey(0)
    kx, k1, k2, kx2 = jax.random.split(key, 4)

    # Small shapes consistent with the module: channels divisible by reduction=16.
    B, C = 2, 32
    REDUCTION = 16
    CR = C // REDUCTION

    # Deterministic synthetic weights (Linear(C, CR, bias=False) and Linear(CR, C, bias=False)).
    w1 = jax.random.normal(k1, (C, CR), dtype=jnp.float32) * (1.0 / jnp.sqrt(C))
    w2 = jax.random.normal(k2, (CR, C), dtype=jnp.float32) * (1.0 / jnp.sqrt(CR))

    # Case 1: S = 8*8*8 = 512 (multiple of 128) -> fused single-pass path.
    x1 = jax.random.normal(kx, (B, C, 8, 8, 8), dtype=jnp.float32)
    o1 = jax.block_until_ready(channel_attention(x1, w1, w2))
    assert o1.shape == x1.shape
    assert jnp.allclose(o1, _reference(x1, w1, w2), atol=1e-5, rtol=1e-5), "fused path (aligned S)"

    # Case 2: ragged S = 5*6*7 = 210 -> fused path with full-dim (non-128-multiple) block.
    x2 = jax.random.normal(kx2, (B, C, 5, 6, 7), dtype=jnp.float32)
    o2 = jax.block_until_ready(channel_attention(x2, w1, w2))
    assert o2.shape == x2.shape
    assert jnp.allclose(o2, _reference(x2, w1, w2), atol=1e-5, rtol=1e-5), "fused path (ragged S)"

    # Cases 3/4: force the streaming two-pass path with tiny tiles to exercise the accumulators,
    # the masked ragged last tile in pass 1, and the partial-edge-block store in pass 2.
    o3 = jax.block_until_ready(
        channel_attention(x1, w1, w2, force_two_pass=True, tile_bytes=8192))
    assert jnp.allclose(o3, _reference(x1, w1, w2), atol=1e-5, rtol=1e-5), "two-pass (aligned S)"

    o4 = jax.block_until_ready(
        channel_attention(x2, w1, w2, force_two_pass=True, tile_bytes=8192))
    assert jnp.allclose(o4, _reference(x2, w1, w2), atol=1e-5, rtol=1e-5), "two-pass (ragged S)"

    print("KERNEL_OK")
</pallas_src>

<mosaic_0001>
module attributes {stable_mosaic.version = 11 : i64} {
  func.func @_fused_kernel(%arg0: i32, %arg1: memref<1x32x512xf32, #tpu.memory_space<vmem>>, %arg2: memref<2x32xf32, #tpu.memory_space<vmem>>, %arg3: memref<32x2xf32, #tpu.memory_space<vmem>>, %arg4: memref<1x32x512xf32, #tpu.memory_space<vmem>>) attributes {dimension_semantics = [#tpu.dimension_semantics<parallel>], iteration_bounds = array<i64: 2>, scalar_prefetch = 0 : i64, scratch_operands = 0 : i64, tpu.core_type = #tpu.core_type<tc>, window_params = [{transform_indices = @transform_0, window_bounds = array<i64: 1, 32, 512>}, {pipeline_mode = #tpu.pipeline_mode<synchronous>, transform_indices = @transform_1, window_bounds = array<i64: 2, 32>}, {pipeline_mode = #tpu.pipeline_mode<synchronous>, transform_indices = @transform_2, window_bounds = array<i64: 32, 2>}, {transform_indices = @transform_3, window_bounds = array<i64: 1, 32, 512>}]} {
    %c0 = arith.constant 0 : index
    %c0_0 = arith.constant 0 : index
    %c0_1 = arith.constant 0 : index
    %0 = vector.load %arg1[%c0, %c0_0, %c0_1] : memref<1x32x512xf32, #tpu.memory_space<vmem>>, vector<1x32x512xf32>
    %1 = vector.shape_cast %0 : vector<1x32x512xf32> to vector<32x512xf32>
    %cst = arith.constant dense<0.000000e+00> : vector<32xf32>
    %2 = vector.multi_reduction <add>, %1, %cst [1] : vector<32x512xf32> to vector<32xf32>
    %3 = vector.shape_cast %2 : vector<32xf32> to vector<32x1xf32>
    %cst_2 = arith.constant 0.001953125 : f32
    %4 = vector.broadcast %cst_2 : f32 to vector<32x1xf32>
    %5 = arith.mulf %3, %4 : vector<32x1xf32>
    %cst_3 = arith.constant dense<0xFF800000> : vector<32xf32>
    %6 = vector.multi_reduction <maximumf>, %1, %cst_3 [1] : vector<32x512xf32> to vector<32xf32>
    %7 = vector.shape_cast %6 : vector<32xf32> to vector<32x1xf32>
    %c0_4 = arith.constant 0 : index
    %c0_5 = arith.constant 0 : index
    %8 = vector.load %arg2[%c0_4, %c0_5] : memref<2x32xf32, #tpu.memory_space<vmem>>, vector<2x32xf32>
    %c0_6 = arith.constant 0 : index
    %c0_7 = arith.constant 0 : index
    %9 = vector.load %arg3[%c0_6, %c0_7] : memref<32x2xf32, #tpu.memory_space<vmem>>, vector<32x2xf32>
    %10 = tpu.iota {dimensions = array<i32: 1>} : vector<32x2xi32>
    %c0_i32 = arith.constant 0 : i32
    %11 = vector.broadcast %c0_i32 : i32 to vector<32x2xi32>
    %12 = arith.cmpi eq, %10, %11 : vector<32x2xi32>
    %13 = vector.shape_cast %5 : vector<32x1xf32> to vector<32x1xf32>
    %14 = vector.broadcast %13 : vector<32x1xf32> to vector<32x2xf32>
    %15 = vector.shape_cast %7 : vector<32x1xf32> to vector<32x1xf32>
    %16 = vector.broadcast %15 : vector<32x1xf32> to vector<32x2xf32>
    %17 = arith.select %12, %14, %16 : vector<32x2xi1>, vector<32x2xf32>
    %cst_8 = arith.constant dense<0.000000e+00> : vector<2x2xf32>
    %18 = tpu.matmul %8, %17, %cst_8 {dimension_numbers = #tpu.dot_dimension_numbers<[1], [0], [0], [1], [0, 0, 1, 1], [], []>} : vector<2x32xf32>, vector<32x2xf32>, vector<2x2xf32> -> vector<2x2xf32>
    %cst_9 = arith.constant 0.000000e+00 : f32
    %19 = vector.broadcast %cst_9 : f32 to vector<2x2xf32>
    %20 = arith.maximumf %18, %19 : vector<2x2xf32>
    %cst_10 = arith.constant dense<0.000000e+00> : vector<32x2xf32>
    %21 = tpu.matmul %9, %20, %cst_10 {dimension_numbers = #tpu.dot_dimension_numbers<[1], [0], [0], [1], [0, 0, 1, 1], [], []>} : vector<32x2xf32>, vector<2x2xf32>, vector<32x2xf32> -> vector<32x2xf32>
    %22 = arith.negf %21 : vector<32x2xf32>
    %23 = math.exp %22 : vector<32x2xf32>
    %cst_11 = arith.constant 1.000000e+00 : f32
    %24 = vector.broadcast %cst_11 : f32 to vector<32x2xf32>
    %25 = arith.addf %24, %23 : vector<32x2xf32>
    %26 = arith.divf %24, %25 : vector<32x2xf32>
    %cst_12 = arith.constant dense<0.000000e+00> : vector<32xf32>
    %27 = vector.multi_reduction <add>, %26, %cst_12 [1] : vector<32x2xf32> to vector<32xf32>
    %28 = vector.shape_cast %27 : vector<32xf32> to vector<32x1xf32>
    %29 = vector.broadcast %28 : vector<32x1xf32> to vector<32x512xf32>
    %30 = arith.mulf %1, %29 : vector<32x512xf32>
    %c0_13 = arith.constant 0 : index
    %c0_14 = arith.constant 0 : index
    %c0_15 = arith.constant 0 : index
    %31 = vector.load %arg4[%c0_13, %c0_14, %c0_15] : memref<1x32x512xf32, #tpu.memory_space<vmem>>, vector<1x32x512xf32>
    %32 = vector.shape_cast %31 : vector<1x32x512xf32> to vector<32x512xf32>
    %33 = vector.shape_cast %30 : vector<32x512xf32> to vector<1x32x512xf32>
    tpu.vector_store %arg4[%c0_13, %c0_14, %c0_15], %33 {strides = array<i32>} : memref<1x32x512xf32, #tpu.memory_space<vmem>>, vector<1x32x512xf32>,
    return
  }
  func.func @transform_0(%arg0: i32) -> (i32, i32, i32) {
    %c0_i32 = arith.constant 0 : i32
    %c0_i32_0 = arith.constant 0 : i32
    %c0_i32_1 = arith.constant 0 : i32
    return %arg0, %c0_i32, %c0_i32_0 : i32, i32, i32
  }
  func.func @transform_1(%arg0: i32) -> (i32, i32) {
    %c0_i32 = arith.constant 0 : i32
    %c0_i32_0 = arith.constant 0 : i32
    %c0_i32_1 = arith.constant 0 : i32
    return %c0_i32, %c0_i32_0 : i32, i32
  }
  func.func @transform_2(%arg0: i32) -> (i32, i32) {
    %c0_i32 = arith.constant 0 : i32
    %c0_i32_0 = arith.constant 0 : i32
    %c0_i32_1 = arith.constant 0 : i32
    return %c0_i32, %c0_i32_0 : i32, i32
  }
  func.func @transform_3(%arg0: i32) -> (i32, i32, i32) {
    %c0_i32 = arith.constant 0 : i32
    %c0_i32_0 = arith.constant 0 : i32
    %c0_i32_1 = arith.constant 0 : i32
    return %arg0, %c0_i32, %c0_i32_0 : i32, i32, i32
  }
}

</mosaic_0001>

<bundles_post_ra>
// kernel: channel_attention.1
= control target key start
LH: loop header
LB: loop body
LE: loop exit
PB: predicated region body
PF: predicated region fallthrough
CT: control target
= control target key end

     0   :  { %s566_s12 = smov 0   ;;  %s733_s0 = inlined_call_operand.vmem [shape: f32[2,32,512], index: 0, kind: input, shape index: {}]   ;;  %s734_s1 = inlined_call_operand.vmem [shape: f32[2,32], index: 1, kind: input, shape index: {}]   ;;  %s735_s2 = inlined_call_operand.vmem [shape: f32[32,2], index: 2, kind: input, shape index: {}]   ;;  %s736_s3 = inlined_call_operand.vmem [shape: f32[2,32,512], index: 3, kind: output, shape index: {}]  }
   0x1 LB: > { %s489_s13 = sadd.s32 4294967295, %s544_s12   ;;  %p493_p0 = scmp.ge.s32.totalorder %s544_s12, 1  ;;  %s544_s12 = sphi %s566_s12, %s13_s12  }
   0x2   : > { %p137_p1 = scmp.lt.s32.totalorder %s544_s12, 3 }
   0x4   : > { %p138_p2 = pnand %p493_p0, %p137_p1 }
   0x5   : > { %p161_p3 = scmp.lt.s32.totalorder (!%p138_p2), %s489_s13, 1 }
   0x6   : > { %141 = sbr.rel (%p138_p2) target bundleno = 578 (0x242), region = 32 }
   0xb   : > { %s738_s13 = smov (!%p161_p3, %s489_s13), 1  ;;  %v236_v40 = vlaneseq  ;;  %v231_v58 = vld [vmem:[%s734_s1] sm:$0x3]  ;;  %vm243_vm1 = vcmask 261120   ;;  %vm281_vm2 = vcmask 1041408   ;;  %vm268_vm3 = vcmask 15360  }
   0xc   : > { %s510_s14 = sshll.u32 %s738_s13, 7  ;;  %v232_v61 = vld [vmem:[%s735_s2] sm:$0xff]  ;;  %v233_v62 = vld [vmem:[%s735_s2 + $0x8] sm:$0xff]  ;;  %v235_v63 = vld [vmem:[%s735_s2 + $0x18] sm:$0xff] }
   0xd   : > { %s582_s17 = scalar_lea.vmem %s733_s0, %s510_s14  ;;  %v237_v41 = vand.u32 127, %v236_v40  ;;  %s696_s30 = scalar_lea.vmem %s736_s3, %s510_s14 }
   0xe   : > { %v585_v0 = vld [vmem:[%s582_s17 + $0x60] sm:$0xff]  ;;  %v588_v1 = vld [vmem:[%s582_s17 + $0x68] sm:$0xff]  ;;  %v591_v2 = vld [vmem:[%s582_s17 + $0x70] sm:$0xff] }
   0xf   : > { %v202_v3 = vadd.f32 %v588_v1, %v585_v0  ;;  %v226_v4 = vmax.f32 %v585_v0, %v588_v1  ;;  %v598_v5 = vld [vmem:[%s582_s17 + $0x40] sm:$0xff]  ;;  %v601_v6 = vld [vmem:[%s582_s17 + $0x48] sm:$0xff]  ;;  %v604_v7 = vld [vmem:[%s582_s17 + $0x78] sm:$0xff]  ;;  %vm238_vm0 = vcmp.eq.s32.totalorder %v237_v41, 0 }
  0x10   : > { %v607_v8 = vld [vmem:[%s582_s17 + $0x50] sm:$0xff]  ;;  %v221_v9 = vmax.f32 %v598_v5, %v601_v6  ;;  %v612_v10 = vld [vmem:[%s582_s17 + $0x20] sm:$0xff]  ;;  %v617_v13 = vld [vmem:[%s582_s17 + $0x58] sm:$0xff]  ;;  %v197_v14 = vadd.f32 %v601_v6, %v598_v5 }
  0x11   : > { %v203_v11 = vadd.f32 %v202_v3, %v591_v2  ;;  %v227_v12 = vmax.f32 %v226_v4, %v591_v2  ;;  %v622_v15 = vld [vmem:[%s582_s17 + $0x28] sm:$0xff]  ;;  %v626_v17 = vld [vmem:[%s582_s17 + $0x30] sm:$0xff]  ;;  %v631_v19 = vld [vmem:[%s582_s17] sm:$0xff] }
  0x12   : > { %v222_v16 = vmax.f32 %v221_v9, %v607_v8  ;;  %v192_v18 = vadd.f32 %v622_v15, %v612_v10  ;;  %v634_v20 = vld [vmem:[%s582_s17 + $0x8] sm:$0xff]  ;;  %v639_v23 = vld [vmem:[%s582_s17 + $0x10] sm:$0xff]  ;;  %v198_v26 = vadd.f32 %v197_v14, %v607_v8  ;;  %v647_v28 = vld [vmem:[%s582_s17 + $0x38] sm:$0xff]  ;;  %v216_v33 = vmax.f32 %v612_v10, %v622_v15 }
  0x13   : > { %v204_v21 = vadd.f32 %v203_v11, %v604_v7  ;;  %v228_v22 = vmax.f32 %v227_v12, %v604_v7  ;;  %v187_v24 = vadd.f32 %v634_v20, %v631_v19  ;;  %v651_v30 = vld [vmem:[%s582_s17 + $0x18] sm:$0xff]  ;;  %v211_v34 = vmax.f32 %v631_v19, %v634_v20  ;;  %v234_v3 = vld [vmem:[%s735_s2 + $0x10] sm:$0xff] }
  0x14   : > { %v223_v25 = vmax.f32 %v222_v16, %v617_v13  ;;  %v193_v27 = vadd.f32 %v192_v18, %v626_v17  ;;  %v199_v31 = vadd.f32 %v198_v26, %v617_v13  ;;  %v217_v36 = vmax.f32 %v216_v33, %v626_v17 }
  0x15   : > { %205 = vadd.xlane.f32.xlu0 %v204_v21  ;;  %229 = vmax.xlane.f32.xlu1 %v228_v22  ;;  %v188_v29 = vadd.f32 %v187_v24, %v639_v23  ;;  %v212_v37 = vmax.f32 %v211_v34, %v639_v23 }
  0x16   : > { %224 = vmax.xlane.f32.xlu2 %v223_v25  ;;  %v194_v32 = vadd.f32 %v193_v27, %v647_v28  ;;  %v218_v38 = vmax.f32 %v217_v36, %v647_v28 }
  0x17   : > { %v189_v35 = vadd.f32 %v188_v29, %v651_v30  ;;  %v213_v39 = vmax.f32 %v212_v37, %v651_v30 }
  0x1d   : > { %200 = vadd.xlane.f32.xlu0 %v199_v31  ;;  %195 = vadd.xlane.f32.xlu1 %v194_v32 }
  0x1e   : > { %190 = vadd.xlane.f32.xlu2 %v189_v35 }
  0x25   : > { %219 = vmax.xlane.f32.xlu0 %v218_v38  ;;  %214 = vmax.xlane.f32.xlu1 %v213_v39 }
  0x88   : > { %v206_v42 = vpop.xlane.xlu0 %205  ;;  %v230_v43 = vpop.xlane.xlu1 %229 }
  0x89   : > { %v210_v44 = vmul.f32 0.001953125, %v206_v42  ;;  %v225_v45 = vpop.xlane.xlu2 %224 }
  0x8b   : > { %v242_v46 = vsel %vm238_vm0, %v210_v44, %v230_v43 }
  0x8c   : > { %259 = vmatpush.msra.mxu0 %v242_v46 }
  0x90   : > { %v201_v47 = vpop.xlane.xlu0 %200  ;;  %v196_v48 = vpop.xlane.xlu1 %195 }
  0x91   : > { %v209_v49 = vmul.f32 0.001953125, %v201_v47  ;;  %v191_v50 = vpop.xlane.xlu2 %190  ;;  %v208_v53 = vmul.f32 0.001953125, %v196_v48 }
  0x92   : > { %v207_v52 = vmul.f32 0.001953125, %v191_v50 }
  0x93   : > { %v241_v51 = vsel %vm238_vm0, %v209_v49, %v225_v45 }
  0x94   : > { %260 = vmatpush.msra.mxu0 %v241_v51 }
  0x98   : > { %v220_v54 = vpop.xlane.xlu0 %219  ;;  %v215_v55 = vpop.xlane.xlu1 %214 }
  0x99   : > { %v240_v56 = vsel %vm238_vm0, %v208_v53, %v220_v54  ;;  %v239_v57 = vsel %vm238_vm0, %v207_v52, %v215_v55 }
  0x9a   : > { %261 = vmatpush.msra.mxu0 %v240_v56 }
  0x9c   : > { %262 = vmatpush.msra.mxu0 %v239_v57 }
  0x9d   : > { %498 = vmatmul.msk.f32.vlgmr.msra.gmra.mxu0 %vm243_vm1, %v231_v58 }
 0x11a   : > { %v264_v59 = vpop.f32.mrf.mxu0 }
 0x11b   : > { %v267_v60 = vmax.f32 %v264_v59, 0.0 }
 0x11d   : > { %499 = vmatpush.msk.msra.mxu1 %vm281_vm2, %v267_v60  ;;  %512 = vmatpush.msk.msra.mxu2 %vm281_vm2, %v267_v60 }
 0x11e   : > { %513 = vmatpush.msk.msra.mxu3 %vm281_vm2, %v267_v60  ;;  %500 = vmatmul.msk.f32.vlgmr.msra.gmra.mxu1 %vm268_vm3, %v232_v61 }
 0x11f   : > { %501 = vmatmul.msk.f32.vlgmr.msra.gmra.mxu2 %vm268_vm3, %v233_v62  ;;  %503 = vmatmul.msk.f32.vlgmr.msra.gmra.mxu3 %vm268_vm3, %v235_v63 }
 0x127   : > { %502 = vmatmul.msk.f32.gmra.mxu2 %vm268_vm3, %v234_v3 }
 0x19b   : > { %v302_v4 = vpop.f32.mrf.mxu1 }
 0x19c   : > { %v504_v9 = vmul.f32 -1.442695, %v302_v4 }
 0x19e   : > { %522 = vpow2.f32 %v504_v9 }
 0x1a2   : > { %v305_v11 = vpop.f32.mrf.mxu2  ;;  %v311_v12 = vpop.f32.mrf.mxu3 }
 0x1a3   : > { %v505_v14 = vmul.f32 -1.442695, %v305_v11  ;;  %v507_v16 = vmul.f32 -1.442695, %v311_v12 }
 0x1a4   : > { %v523_v18 = vpop.eup %522 }
 0x1a5   : > { %v326_v21 = vadd.f32 1.0, %v523_v18  ;;  %524 = vpow2.f32 %v505_v14 }
 0x1a6   : > { %526 = vpow2.f32 %v507_v16 }
 0x1a7   : > { %528 = vrcp.f32 %v326_v21  ;;  %v341_v34 = vand.u32 2147483648, %v326_v21  ;;  %vm335_vm4 = vweird.f32 %v326_v21  ;;  %v339_v36 = vand.u32 2147483647, %v326_v21 }
 0x1a9   : > { %v342_v42 = vor.u32 1.1754944e-38, %v341_v34  ;;  %vm340_vm7 = vcmp.eq.f32.partialorder %v339_v36, 8.507059e+37 }
 0x1aa   : > { %v308_v22 = vpop.f32.mrf.mxu2 }
 0x1ab   : > { %v525_v24 = vpop.eup %524  ;;  %v506_v25 = vmul.f32 -1.442695, %v308_v22 }
 0x1ac   : > { %v527_v26 = vpop.eup %526  ;;  %v327_v27 = vadd.f32 1.0, %v525_v24 }
 0x1ad   : > { %v529_v29 = vpop.eup %528  ;;  %v329_v31 = vadd.f32 1.0, %v527_v26  ;;  %530 = vpow2.f32 %v506_v25 }
 0x1ae   : > { %532 = vrcp.f32 %v327_v27  ;;  %v331_v32 = vmul.f32 %v529_v29, %v326_v21  ;;  %vm336_vm5 = vweird.f32 %v529_v29  ;;  %v356_v49 = vand.u32 2147483648, %v327_v27 }
 0x1af   : > { %534 = vrcp.f32 %v329_v31  ;;  %vm337_vm6 = vmor %vm335_vm4, %vm336_vm5  ;;  %v354_v52 = vand.u32 2147483647, %v327_v27  ;;  %v386_v53 = vand.u32 2147483648, %v329_v31  ;;  %vm380_vm9 = vweird.f32 %v329_v31 }
 0x1b0   : > { %v332_v33 = vsub.f32 1.0, %v331_v32  ;;  %v384_v55 = vand.u32 2147483647, %v329_v31  ;;  %vm350_vm11 = vweird.f32 %v327_v27  ;;  %v357_v58 = vor.u32 1.1754944e-38, %v356_v49 }
 0x1b1   : > { %vm355_vm13 = vcmp.eq.f32.partialorder %v354_v52, 8.507059e+37  ;;  %v387_v61 = vor.u32 1.1754944e-38, %v386_v53 }
 0x1b2   : > { %v333_v35 = vmul.f32 %v529_v29, %v332_v33  ;;  %vm385_vm15 = vcmp.eq.f32.partialorder %v384_v55, 8.507059e+37 }
 0x1b3   : > { %v531_v37 = vpop.eup %530 }
 0x1b4   : > { %v533_v38 = vpop.eup %532  ;;  %v328_v39 = vadd.f32 1.0, %v531_v37  ;;  %v334_v40 = vadd.f32 %v529_v29, %v333_v35 }
 0x1b5   : > { %v535_v41 = vpop.eup %534  ;;  %v346_v43 = vmul.f32 %v533_v38, %v327_v27  ;;  %vm351_vm8 = vweird.f32 %v533_v38 }
 0x1b6   : > { %536 = vrcp.f32 %v328_v39  ;;  %v338_v44 = vsel %vm337_vm6, %v529_v29, %v334_v40  ;;  %v376_v45 = vmul.f32 %v535_v41, %v329_v31  ;;  %vm381_vm10 = vweird.f32 %v535_v41  ;;  %vm352_vm12 = vmor %vm350_vm11, %vm351_vm8 }
 0x1b7   : > { %v343_v46 = vsel %vm340_vm7, %v342_v42, %v338_v44  ;;  %v347_v47 = vsub.f32 1.0, %v346_v43  ;;  %vm382_vm14 = vmor %vm380_vm9, %vm381_vm10  ;;  %v371_v14 = vand.u32 2147483648, %v328_v39  ;;  %v369_v18 = vand.u32 2147483647, %v328_v39 }
 0x1b8   : > { %v390_v48 = vsel %vm268_vm3, %v343_v46, 0.0  ;;  %v377_v50 = vsub.f32 1.0, %v376_v45  ;;  %vm365_vm1 = vweird.f32 %v328_v39 }
 0x1b9   : > { %391 = vadd.xlane.f32.xlu2 %v390_v48  ;;  %v348_v51 = vmul.f32 %v533_v38, %v347_v47  ;;  %v372_v22 = vor.u32 1.1754944e-38, %v371_v14  ;;  %vm370_vm4 = vcmp.eq.f32.partialorder %v369_v18, 8.507059e+37 }
 0x1ba   : > { %v378_v54 = vmul.f32 %v535_v41, %v377_v50 }
 0x1bb   : > { %v349_v56 = vadd.f32 %v533_v38, %v348_v51 }
 0x1bc   : > { %v537_v57 = vpop.eup %536  ;;  %v379_v59 = vadd.f32 %v535_v41, %v378_v54 }
 0x1bd   : > { %v353_v60 = vsel %vm352_vm12, %v533_v38, %v349_v56  ;;  %v361_v62 = vmul.f32 %v537_v57, %v328_v39  ;;  %vm366_vm0 = vweird.f32 %v537_v57 }
 0x1be   : > { %v358_v63 = vsel %vm355_vm13, %v357_v58, %v353_v60  ;;  %v383_v3 = vsel %vm382_vm14, %v535_v41, %v379_v59  ;;  %vm367_vm2 = vmor %vm365_vm1, %vm366_vm0 }
 0x1bf   : > { %v393_v4 = vsel %vm268_vm3, %v358_v63, 0.0  ;;  %v388_v9 = vsel %vm385_vm15, %v387_v61, %v383_v3  ;;  %v362_v11 = vsub.f32 1.0, %v361_v62 }
 0x1c0   : > { %394 = vadd.xlane.f32.xlu0 %v393_v4  ;;  %v399_v12 = vsel %vm268_vm3, %v388_v9, 0.0 }
 0x1c1   : > { %400 = vadd.xlane.f32.xlu2 %v399_v12  ;;  %v363_v16 = vmul.f32 %v537_v57, %v362_v11 }
 0x1c3   : > { %v364_v21 = vadd.f32 %v537_v57, %v363_v16 }
 0x1c5   : > { %v368_v24 = vsel %vm367_vm2, %v537_v57, %v364_v21 }
 0x1c6   : > { %v373_v25 = vsel %vm370_vm4, %v372_v22, %v368_v24 }
 0x1c7   : > { %v396_v26 = vsel %vm268_vm3, %v373_v25, 0.0 }
 0x1c8   : > { %397 = vadd.xlane.f32.xlu1 %v396_v26 }
 0x22c   : > { %v392_v27 = vpop.xlane.xlu2 %391 }
 0x22d   : > { %v402_v29 = vmul.f32 %v392_v27, %v631_v19  ;;  %v403_v31 = vmul.f32 %v392_v27, %v634_v20  ;;  %v404_v32 = vmul.f32 %v392_v27, %v639_v23  ;;  %v405_v33 = vmul.f32 %v392_v27, %v651_v30 }
 0x22f   : > { %418 = vst [vmem:[%s696_s30] sm:$0xff] %v402_v29 }
 0x230   : > { %419 = vst [vmem:[%s696_s30 + $0x8] sm:$0xff] %v403_v31 }
 0x231   : > { %420 = vst [vmem:[%s696_s30 + $0x10] sm:$0xff] %v404_v32 }
 0x232   : > { %421 = vst [vmem:[%s696_s30 + $0x18] sm:$0xff] %v405_v33 }
 0x233   : > { %v395_v34 = vpop.xlane.xlu0 %394 }
 0x234   : > { %v406_v35 = vmul.f32 %v395_v34, %v612_v10  ;;  %v407_v19 = vmul.f32 %v395_v34, %v622_v15  ;;  %v408_v20 = vmul.f32 %v395_v34, %v626_v17  ;;  %v401_v36 = vpop.xlane.xlu2 %400  ;;  %v409_v23 = vmul.f32 %v395_v34, %v647_v28 }
 0x235   : > { %v414_v30 = vmul.f32 %v401_v36, %v585_v0  ;;  %v415_v37 = vmul.f32 %v401_v36, %v588_v1  ;;  %v416_v10 = vmul.f32 %v401_v36, %v591_v2  ;;  %v417_v15 = vmul.f32 %v401_v36, %v604_v7 }
 0x236   : > { %422 = vst [vmem:[%s696_s30 + $0x20] sm:$0xff] %v406_v35 }
 0x237   : > { %423 = vst [vmem:[%s696_s30 + $0x28] sm:$0xff] %v407_v19 }
 0x238   : > { %424 = vst [vmem:[%s696_s30 + $0x30] sm:$0xff] %v408_v20 }
 0x239   : > { %425 = vst [vmem:[%s696_s30 + $0x38] sm:$0xff] %v409_v23 }
 0x23a   : > { %430 = vst [vmem:[%s696_s30 + $0x60] sm:$0xff] %v414_v30 }
 0x23b   : > { %431 = vst [vmem:[%s696_s30 + $0x68] sm:$0xff] %v415_v37  ;;  %v398_v17 = vpop.xlane.xlu1 %397 }
 0x23c   : > { %432 = vst [vmem:[%s696_s30 + $0x70] sm:$0xff] %v416_v10  ;;  %v410_v28 = vmul.f32 %v398_v17, %v598_v5  ;;  %v411_v0 = vmul.f32 %v398_v17, %v601_v6  ;;  %v412_v38 = vmul.f32 %v398_v17, %v607_v8  ;;  %v413_v1 = vmul.f32 %v398_v17, %v617_v13 }
 0x23d   : > { %433 = vst [vmem:[%s696_s30 + $0x78] sm:$0xff] %v417_v15 }
 0x23e   : > { %426 = vst [vmem:[%s696_s30 + $0x40] sm:$0xff] %v410_v28 }
 0x23f   : > { %427 = vst [vmem:[%s696_s30 + $0x48] sm:$0xff] %v411_v0 }
 0x240   : > { %428 = vst [vmem:[%s696_s30 + $0x50] sm:$0xff] %v412_v38 }
 0x241   : > { %429 = vst [vmem:[%s696_s30 + $0x58] sm:$0xff] %v413_v1 }
 0x242 PF: > { %s13_s12 = sadd.s32 1, %s544_s12  }
 0x243   : > { %p10_p4 = scmp.ge.s32.totalorder %s13_s12, 4  }
 0x245   :  { %12 = sbr.rel (!%p10_p4) target bundleno = 1 (0x1), region = 62 }

</bundles_post_ra>
